<compile_context>
chip_gen: v6e
topology: v6e:2x2x1
jax: 0.10.0
libtpu: 0.0.40
codegen_flags: <defaults>
</compile_context>

<pallas_src>
import jax
import jax.numpy as jnp
from jax.experimental import pallas as pl
from jax.experimental.pallas import tpu as pltpu


# ---------------------------------------------------------------------------
# Kernels (built per (tile_b, masked) so the small batch loop is static/unrolled)
# ---------------------------------------------------------------------------

def _make_kernel(tile_b: int, masked: bool):
    if masked:
        def kernel(x_ref, m_ref, wt_ref, b_ref, o_ref):
            # x_ref : (TILE_B, L, TILE_E)  activations
            # m_ref : (TILE_B, 1, L)       0/1 mask rows
            # wt_ref: (L, L)               pre-transposed weights, wt[l, k] = W[k, l]
            # b_ref : (L, 1) f32           bias column
            # o_ref : (TILE_B, L, TILE_E)
            wt = wt_ref[...]
            bias = b_ref[...]
            for i in range(tile_b):                     # static unroll, tile_b <= 16
                m = m_ref[i]                            # (1, L)
                wt_m = wt * m.astype(wt.dtype)          # mask the contraction dim k
                acc = jnp.dot(wt_m, x_ref[i], preferred_element_type=jnp.float32)
                o_ref[i] = (acc + bias).astype(o_ref.dtype)
        return kernel

    def kernel(x_ref, wt_ref, b_ref, o_ref):
        wt = wt_ref[...]
        bias = b_ref[...]
        for i in range(tile_b):
            acc = jnp.dot(wt, x_ref[i], preferred_element_type=jnp.float32)
            o_ref[i] = (acc + bias).astype(o_ref.dtype)
    return kernel


# ---------------------------------------------------------------------------
# Tiling heuristics
# ---------------------------------------------------------------------------

_VMEM_BUDGET = 40 * 2**20        # fits v7x (64 MiB VMEM) with headroom; fine on v5e/v6e
_TARGET_BLOCK_BYTES = 2 * 2**20  # per x block, per pipeline buffer
_MAX_TILE_B = 16                 # bound on the in-kernel unrolled batch loop


def _pick_tile_e(E, L_pad, itemsize, budget):
    """Lane-dense embedding tile: full E when it fits, else largest 128-multiple
    whose double-buffered x/out blocks fit the remaining VMEM budget."""
    if E <= 2048 and 4 * L_pad * E * itemsize <= budget:
        return E
    for te in (2048, 1024, 512, 256, 128):
        if te <= E and 4 * L_pad * te * itemsize <= budget:
            return te
    return E if E < 128 else 128


def _pick_tiles(B, L_pad, E, itemsize):
    w_bytes = 2 * L_pad * L_pad * itemsize            # double-buffered weight tile
    budget = max(_VMEM_BUDGET - w_bytes, 4 * 2**20)
    tile_e = _pick_tile_e(E, L_pad, itemsize, budget)

    # Batch tile: largest divisor of B (so every block is full / no partial-block
    # stores) within the per-block byte target and the VMEM budget.
    blk = max(1, L_pad * tile_e * itemsize)
    cap = int(min(_MAX_TILE_B,
                  max(1, _TARGET_BLOCK_BYTES // blk),
                  max(1, budget // (4 * blk))))
    tile_b = 1
    for cand in range(2, min(B, cap) + 1):
        if B % cand == 0:
            tile_b = cand
    return tile_b, tile_e


# ---------------------------------------------------------------------------
# Wrapper
# ---------------------------------------------------------------------------

def spatial_linear(x, weights, biases, mask=None, *, tile_b=None, tile_e=None):
    """Pallas implementation of SpatialLinear.forward (toeplitz=False).

    x:       (B, L, E) float (f32 or bf16; bf16 recommended on v6e/v7x)
    weights: (spatial_dim, spatial_dim) float  (sliced to (L, L))
    biases:  (spatial_dim,) float              (sliced to (L,))
    mask:    optional (B, L) {0,1} mask
    returns  (B, L, E) in x.dtype
    """
    B, L, E = x.shape
    cdt = x.dtype
    itemsize = jnp.dtype(cdt).itemsize

    # Parameter glue (equivalent to _get_weights_and_biases), pre-transposed so the
    # kernel runs a plain (L, L) @ (L, TILE_E) matmul on the MXU.
    wt = weights[:L, :L].T.astype(cdt)              # wt[l, k] = W[k, l]
    bcol = biases[:L].astype(jnp.float32)

    # Pad L up to a sublane multiple (8 for f32, 16 for bf16) only when needed.
    sub = max(8, 32 // itemsize)
    L_pad = ((L + sub - 1) // sub) * sub
    if L_pad != L:
        pad = L_pad - L
        x = jnp.pad(x, ((0, 0), (0, pad), (0, 0)))          # zero rows -> no contribution
        wt = jnp.pad(wt, ((0, pad), (0, pad)))
        bcol = jnp.pad(bcol, (0, pad))
    bcol = bcol.reshape(L_pad, 1)

    auto_tb, auto_te = _pick_tiles(B, L_pad, E, itemsize)
    if tile_b is None:
        tile_b = auto_tb
    if tile_e is None:
        tile_e = auto_te
    assert B % tile_b == 0, (B, tile_b)
    grid = (B // tile_b, pl.cdiv(E, tile_e))

    x_spec = pl.BlockSpec((tile_b, L_pad, tile_e), lambda bb, ee: (bb, 0, ee))
    wt_spec = pl.BlockSpec((L_pad, L_pad), lambda bb, ee: (0, 0))     # grid-invariant
    b_spec = pl.BlockSpec((L_pad, 1), lambda bb, ee: (0, 0))          # grid-invariant
    out_spec = pl.BlockSpec((tile_b, L_pad, tile_e), lambda bb, ee: (bb, 0, ee))

    # VMEM estimate: double-buffered x + out, double-buffered weight tile, bias/mask noise.
    est = (4 * tile_b * L_pad * tile_e * itemsize
           + 2 * L_pad * L_pad * itemsize
           + 4 * tile_b * L_pad * itemsize
           + 8 * L_pad * 4)
    vmem_limit = int(min(64 * 2**20, max(32 * 2**20, 1.5 * est)))

    cparams = pltpu.CompilerParams(
        dimension_semantics=("parallel", "parallel"),   # batch x E tiles: feeds both v7x cores
        vmem_limit_bytes=vmem_limit,
    )
    out_shape = jax.ShapeDtypeStruct((B, L_pad, E), cdt)

    if mask is None:
        out = pl.pallas_call(
            _make_kernel(tile_b, masked=False),
            out_shape=out_shape,
            grid_spec=pltpu.PrefetchScalarGridSpec(
                num_scalar_prefetch=0,
                grid=grid,
                in_specs=[x_spec, wt_spec, b_spec],
                out_specs=out_spec,
            ),
            compiler_params=cparams,
        )(x, wt, bcol)
    else:
        # Ship the mask as a lane-major (B, 1, L) row tensor; one tiny (TILE_B, 1, L)
        # block per grid step, folded into the weight tile inside the kernel.
        m = mask.astype(cdt).reshape(B, 1, L)
        if L_pad != L:
            m = jnp.pad(m, ((0, 0), (0, 0), (0, L_pad - L)))
        m_spec = pl.BlockSpec((tile_b, 1, L_pad), lambda bb, ee: (bb, 0, 0))
        out = pl.pallas_call(
            _make_kernel(tile_b, masked=True),
            out_shape=out_shape,
            grid_spec=pltpu.PrefetchScalarGridSpec(
                num_scalar_prefetch=0,
                grid=grid,
                in_specs=[x_spec, m_spec, wt_spec, b_spec],
                out_specs=out_spec,
            ),
            compiler_params=cparams,
        )(x, m, wt, bcol)

    if L_pad != L:
        out = out[:, :L, :]
    return out


# ---------------------------------------------------------------------------
# Pure-JAX reference mirroring the PyTorch forward exactly
# ---------------------------------------------------------------------------

def ref_forward(x, weights, biases, mask=None):
    B, L, E = x.shape
    xi = jnp.swapaxes(x, 1, 2).reshape(-1, L)            # (B*E, L)
    if mask is not None:
        m = jnp.repeat(mask.astype(x.dtype), E, axis=0)  # repeat_interleave(E, dim=0)
        xi = xi * m
    w = weights[:L, :L]
    b = biases[:L]
    out = xi.astype(jnp.float32) @ w.astype(jnp.float32) + b.astype(jnp.float32)
    return jnp.swapaxes(out.reshape(B, E, L), 1, 2)


# ---------------------------------------------------------------------------
# Demo / self-test
# ---------------------------------------------------------------------------

if __name__ == "__main__":
    key = jax.random.PRNGKey(0)
    k_x, k_w, k_b, k_x2 = jax.random.split(key, 4)

    B, L, E = 2, 16, 32          # batch, max_length (== spatial_dim), embedding_dim
    spatial_dim = L

    x = jax.random.normal(k_x, (B, L, E), dtype=jnp.float32)
    weights = jax.random.normal(k_w, (spatial_dim, spatial_dim), dtype=jnp.float32)
    biases = jax.random.normal(k_b, (spatial_dim,), dtype=jnp.float32)

    # Deterministic padding mask: sequence lengths [16, 10].
    lengths = jnp.array([16, 10], dtype=jnp.int32)
    mask = (jnp.arange(L)[None, :] < lengths[:, None]).astype(jnp.float32)

    # 1) masked, f32
    out = jax.block_until_ready(spatial_linear(x, weights, biases, mask))
    exp = ref_forward(x, weights, biases, mask)
    assert out.shape == (B, L, E), out.shape
    assert jnp.allclose(out, exp, atol=1e-4, rtol=1e-4), float(jnp.max(jnp.abs(out - exp)))

    # 2) no mask, f32
    out_nm = jax.block_until_ready(spatial_linear(x, weights, biases))
    exp_nm = ref_forward(x, weights, biases)
    assert jnp.allclose(out_nm, exp_nm, atol=1e-4, rtol=1e-4)

    # 3) unaligned max_length exercising the wrapper-side L padding (L=12 -> 16)
    L2 = 12
    x2 = x[:, :L2, :]
    mask2 = mask[:, :L2]
    out2 = jax.block_until_ready(spatial_linear(x2, weights, biases, mask2))
    exp2 = ref_forward(x2, weights, biases, mask2)
    assert out2.shape == (B, L2, E)
    assert jnp.allclose(out2, exp2, atol=1e-4, rtol=1e-4)

    # 4) bf16 activations (halves HBM traffic on v6e/v7x), f32 accumulation in-kernel
    xb = x.astype(jnp.bfloat16)
    outb = jax.block_until_ready(spatial_linear(xb, weights, biases, mask))
    w_b = weights.astype(jnp.bfloat16).astype(jnp.float32)
    expb = ref_forward(xb.astype(jnp.float32), w_b, biases, mask)
    assert outb.dtype == jnp.bfloat16
    assert jnp.allclose(outb.astype(jnp.float32), expb, atol=5e-2, rtol=5e-2)

    # 5) larger batch / embedding: exercises the batch tile (TILE_B > 1) path
    B3, E3 = 4, 256
    x3 = jax.random.normal(k_x2, (B3, L, E3), dtype=jnp.float32)
    lengths3 = jnp.array([16, 10, 7, 16], dtype=jnp.int32)
    mask3 = (jnp.arange(L)[None, :] < lengths3[:, None]).astype(jnp.float32)
    out3 = jax.block_until_ready(spatial_linear(x3, weights, biases, mask3))
    exp3 = ref_forward(x3, weights, biases, mask3)
    assert out3.shape == (B3, L, E3)
    assert jnp.allclose(out3, exp3, atol=1e-4, rtol=1e-4)

    print("KERNEL_OK")
</pallas_src>

<mosaic_0001>
module attributes {stable_mosaic.version = 11 : i64} {
  func.func @kernel(%arg0: i32, %arg1: i32, %arg2: memref<2x16x32xf32, #tpu.memory_space<vmem>>, %arg3: memref<2x1x16xf32, #tpu.memory_space<vmem>>, %arg4: memref<16x16xf32, #tpu.memory_space<vmem>>, %arg5: memref<16x1xf32, #tpu.memory_space<vmem>>, %arg6: memref<2x16x32xf32, #tpu.memory_space<vmem>>) attributes {dimension_semantics = [#tpu.dimension_semantics<parallel>, #tpu.dimension_semantics<parallel>], iteration_bounds = array<i64: 1, 1>, scalar_prefetch = 0 : i64, scratch_operands = 0 : i64, tpu.core_type = #tpu.core_type<tc>, window_params = [{transform_indices = @transform_0, window_bounds = array<i64: 2, 16, 32>}, {transform_indices = @transform_1, window_bounds = array<i64: 2, 1, 16>}, {pipeline_mode = #tpu.pipeline_mode<synchronous>, transform_indices = @transform_2, window_bounds = array<i64: 16, 16>}, {pipeline_mode = #tpu.pipeline_mode<synchronous>, transform_indices = @transform_3, window_bounds = array<i64: 16, 1>}, {transform_indices = @transform_4, window_bounds = array<i64: 2, 16, 32>}]} {
    %c0 = arith.constant 0 : index
    %c0_0 = arith.constant 0 : index
    %0 = vector.load %arg4[%c0, %c0_0] : memref<16x16xf32, #tpu.memory_space<vmem>>, vector<16x16xf32>
    %c0_1 = arith.constant 0 : index
    %c0_2 = arith.constant 0 : index
    %1 = vector.load %arg5[%c0_1, %c0_2] : memref<16x1xf32, #tpu.memory_space<vmem>>, vector<16x1xf32>
    %c0_3 = arith.constant 0 : index
    %c0_4 = arith.constant 0 : index
    %c0_5 = arith.constant 0 : index
    %2 = vector.load %arg3[%c0_3, %c0_4, %c0_5] : memref<2x1x16xf32, #tpu.memory_space<vmem>>, vector<1x1x16xf32>
    %3 = vector.shape_cast %2 : vector<1x1x16xf32> to vector<1x16xf32>
    %4 = vector.broadcast %3 : vector<1x16xf32> to vector<16x16xf32>
    %5 = arith.mulf %0, %4 : vector<16x16xf32>
    %c0_6 = arith.constant 0 : index
    %c0_7 = arith.constant 0 : index
    %c0_8 = arith.constant 0 : index
    %6 = vector.load %arg2[%c0_6, %c0_7, %c0_8] : memref<2x16x32xf32, #tpu.memory_space<vmem>>, vector<1x16x32xf32>
    %7 = vector.shape_cast %6 : vector<1x16x32xf32> to vector<16x32xf32>
    %cst = arith.constant dense<0.000000e+00> : vector<16x32xf32>
    %8 = tpu.matmul %5, %7, %cst {dimension_numbers = #tpu.dot_dimension_numbers<[1], [0], [0], [1], [0, 0, 1, 1], [], []>} : vector<16x16xf32>, vector<16x32xf32>, vector<16x32xf32> -> vector<16x32xf32>
    %9 = vector.broadcast %1 : vector<16x1xf32> to vector<16x32xf32>
    %10 = arith.addf %8, %9 : vector<16x32xf32>
    %c0_9 = arith.constant 0 : index
    %c0_10 = arith.constant 0 : index
    %c0_11 = arith.constant 0 : index
    %11 = vector.load %arg6[%c0_9, %c0_10, %c0_11] : memref<2x16x32xf32, #tpu.memory_space<vmem>>, vector<1x16x32xf32>
    %12 = vector.shape_cast %11 : vector<1x16x32xf32> to vector<16x32xf32>
    %13 = vector.shape_cast %10 : vector<16x32xf32> to vector<1x16x32xf32>
    tpu.vector_store %arg6[%c0_9, %c0_10, %c0_11], %13 {strides = array<i32>} : memref<2x16x32xf32, #tpu.memory_space<vmem>>, vector<1x16x32xf32>,
    %c1 = arith.constant 1 : index
    %c0_12 = arith.constant 0 : index
    %c0_13 = arith.constant 0 : index
    %14 = vector.load %arg3[%c1, %c0_12, %c0_13] : memref<2x1x16xf32, #tpu.memory_space<vmem>>, vector<1x1x16xf32>
    %15 = vector.shape_cast %14 : vector<1x1x16xf32> to vector<1x16xf32>
    %16 = vector.broadcast %15 : vector<1x16xf32> to vector<16x16xf32>
    %17 = arith.mulf %0, %16 : vector<16x16xf32>
    %c1_14 = arith.constant 1 : index
    %c0_15 = arith.constant 0 : index
    %c0_16 = arith.constant 0 : index
    %18 = vector.load %arg2[%c1_14, %c0_15, %c0_16] : memref<2x16x32xf32, #tpu.memory_space<vmem>>, vector<1x16x32xf32>
    %19 = vector.shape_cast %18 : vector<1x16x32xf32> to vector<16x32xf32>
    %cst_17 = arith.constant dense<0.000000e+00> : vector<16x32xf32>
    %20 = tpu.matmul %17, %19, %cst_17 {dimension_numbers = #tpu.dot_dimension_numbers<[1], [0], [0], [1], [0, 0, 1, 1], [], []>} : vector<16x16xf32>, vector<16x32xf32>, vector<16x32xf32> -> vector<16x32xf32>
    %21 = vector.broadcast %1 : vector<16x1xf32> to vector<16x32xf32>
    %22 = arith.addf %20, %21 : vector<16x32xf32>
    %c1_18 = arith.constant 1 : index
    %c0_19 = arith.constant 0 : index
    %c0_20 = arith.constant 0 : index
    %23 = vector.load %arg6[%c1_18, %c0_19, %c0_20] : memref<2x16x32xf32, #tpu.memory_space<vmem>>, vector<1x16x32xf32>
    %24 = vector.shape_cast %23 : vector<1x16x32xf32> to vector<16x32xf32>
    %25 = vector.shape_cast %22 : vector<16x32xf32> to vector<1x16x32xf32>
    tpu.vector_store %arg6[%c1_18, %c0_19, %c0_20], %25 {strides = array<i32>} : memref<2x16x32xf32, #tpu.memory_space<vmem>>, vector<1x16x32xf32>,
    return
  }
  func.func @transform_0(%arg0: i32, %arg1: i32) -> (i32, i32, i32) {
    %c0_i32 = arith.constant 0 : i32
    %c0_i32_0 = arith.constant 0 : i32
    return %arg0, %c0_i32, %arg1 : i32, i32, i32
  }
  func.func @transform_1(%arg0: i32, %arg1: i32) -> (i32, i32, i32) {
    %c0_i32 = arith.constant 0 : i32
    %c0_i32_0 = arith.constant 0 : i32
    %c0_i32_1 = arith.constant 0 : i32
    return %arg0, %c0_i32, %c0_i32_0 : i32, i32, i32
  }
  func.func @transform_2(%arg0: i32, %arg1: i32) -> (i32, i32) {
    %c0_i32 = arith.constant 0 : i32
    %c0_i32_0 = arith.constant 0 : i32
    %c0_i32_1 = arith.constant 0 : i32
    return %c0_i32, %c0_i32_0 : i32, i32
  }
  func.func @transform_3(%arg0: i32, %arg1: i32) -> (i32, i32) {
    %c0_i32 = arith.constant 0 : i32
    %c0_i32_0 = arith.constant 0 : i32
    %c0_i32_1 = arith.constant 0 : i32
    return %c0_i32, %c0_i32_0 : i32, i32
  }
  func.func @transform_4(%arg0: i32, %arg1: i32) -> (i32, i32, i32) {
    %c0_i32 = arith.constant 0 : i32
    %c0_i32_0 = arith.constant 0 : i32
    return %arg0, %c0_i32, %arg1 : i32, i32, i32
  }
}

</mosaic_0001>

<bundles_post_ra>
// kernel: tpu_custom_call.1
= control target key start
LH: loop header
LB: loop body
LE: loop exit
PB: predicated region body
PF: predicated region fallthrough
CT: control target
= control target key end

     0   :  { %9 = vsyncpa [#allocation3], 0  ;;  %s395_s0 = inlined_call_operand.hbm [shape: f32[2,16,32], index: 0, kind: input, shape index: {}]   ;;  %s396_s1 = inlined_call_operand.vmem [shape: f32[2,1,16], index: 1, kind: input, shape index: {}]   ;;  %s397_s2 = inlined_call_operand.vmem [shape: f32[16,16], index: 2, kind: input, shape index: {}]   ;;  %s398_s3 = inlined_call_operand.vmem [shape: f32[16,1], index: 3, kind: input, shape index: {}]   ;;  %s399_s4 = inlined_call_operand.hbm [shape: f32[2,16,32], index: 4, kind: output, shape index: {}]  }
   0x1   :  { %10 = vsyncpa [#allocation4], 0  ;;  %s335_s15 = smov [#allocation2]  }
   0x2   :  { %s16_s16 = sshll.u32 %s335_s15, 4  ;;  %s17_s16 = int_to_ptr.vmem [resolvable:$true] %s16_s16 }
   0x3   :  { %s299_s17 = scalar_lea.vmem %s17_s16, 512  ;;  %p304_p1 = scmp.lt.s32.totalorder %s17_s16, %s17_s16 }
   0x4   :  { %p300_p0 = scmp.ne.s32.totalorder %s17_s16, %s299_s17  ;;  %p305_p2 = scmp.lt.s32.totalorder %s299_s17, %s299_s17 }
   0x6   :  { %p306_p3 = por %p305_p2, %p304_p1 }
   0x8   :  { %p307_p4 = pnand %p306_p3, %p300_p0 }
   0xa   :  { %310 = shalt.err (!%p307_p4)
}
   0xb   :  { %s336_s18 = smov 128   ;;  %s337_s19 = smov 8  }
   0xc   :  { %22 = dma.hbm_to_vmem [thread:$0]  %s395_s0, 512, %s17_s16, [#allocation3], %s336_s18, %s336_s18, %s337_s19  }
   0xd   :  { %331 = dma.done.wait [#allocation3], 512  }
   0xe   :  { %332 = vsyncadd [#allocation3], 4294966784  ;;  %v338_v0 = vmov 0   ;;  %v46_v1 = vld [vmem:[#allocation2 + $0x8] sm:$0xff]  ;;  %v154_v2 = vld [vmem:[#allocation2 + $0x18] sm:$0xff]  ;;  %vm57_vm0 = vcmask 130048  }
   0xf   :  { %290 = vset.pattern.permute.xlu0 %v338_v0  ;;  %v45_v3 = vld [vmem:[#allocation2] sm:$0xff]  ;;  %271 = vmatprep.subr.mxu0 %v46_v1  ;;  %v153_v4 = vld [vmem:[#allocation2 + $0x10] sm:$0xff]  ;;  %v33_v6 = vld [vmem:[%s397_s2 + $0x8] sm:$0xff]  ;;  %vm139_vm1 = vcmask 261120  }
  0x10   :  { %278 = vmatprep.subr.mxu1 %v154_v2  ;;  %v32_v5 = vld [vmem:[%s397_s2] sm:$0xff]  ;;  %272 = vmatpush3.msra.mxu0 %v46_v1  ;;  %v35_v14 = vld [vmem:[%s398_s3 + $0x8] sm:$0xff] }
  0x11   :  { %279 = vmatpush3.msra.mxu1 %v154_v2  ;;  %v256_v7 = vld [vmem:[%s396_s1] ss:$0 sm:$0xff]  ;;  %v260_v8 = vld [vmem:[%s396_s1 + $0x1] ss:$0 sm:$0xff]  ;;  %273 = vmatprep.subr.mxu0 %v45_v3  ;;  %s339_s1 = smov [#allocation5]  }
  0x12   :  { %280 = vmatprep.subr.mxu1 %v153_v4  ;;  %v43_v9 = vmul.f32 %v256_v7, %v32_v5  ;;  %v44_v10 = vmul.f32 %v256_v7, %v33_v6  ;;  %v150_v11 = vmul.f32 %v260_v8, %v32_v5  ;;  %274 = vmatpush3.msra.mxu0 %v45_v3  ;;  %v34_v13 = vld [vmem:[%s398_s3] sm:$0xff]  ;;  %s244_s6 = sshll.u32 %s339_s1, 4  ;;  %s245_s6 = int_to_ptr.vmem [resolvable:$true] %s244_s6 }
  0x13   :  { %281 = vmatpush3.msra.mxu1 %v153_v4  ;;  %v151_v12 = vmul.f32 %v260_v8, %v33_v6  ;;  %49 = vperm.xlu0 %290, %v34_v13   ;;  %s311_s3 = scalar_lea.vmem %s245_s6, 512  ;;  %p316_p6 = scmp.lt.s32.totalorder %s245_s6, %s245_s6 }
  0x14   :  { %275 = vmatprep.mubr.msk.f32.mxu0 %vm57_vm0, %v43_v9  ;;  %282 = vmatprep.mubr.msk.f32.mxu1 %vm57_vm0, %v150_v11  ;;  %p312_p5 = scmp.ne.s32.totalorder %s245_s6, %s311_s3  ;;  %p317_p7 = scmp.lt.s32.totalorder %s311_s3, %s311_s3 }
  0x15   :  { %276 = vmatmul.mubr.msk.f32.vlgmr.msra.gmra.mxu0 %vm57_vm0, %v44_v10  ;;  %283 = vmatmul.mubr.msk.f32.vlgmr.msra.gmra.mxu1 %vm57_vm0, %v151_v12 }
  0x16   :  { %p318_p8 = por %p317_p7, %p316_p6 }
  0x17   :  { %54 = vperm.xlu0 %290, %v35_v14  }
  0x18   :  { %p319_p9 = pnand %p318_p8, %p312_p5 }
  0x8e   :  { %v50_v15 = vpop.permute.xlu0 %49 }
  0x92   :  { %v55_v16 = vpop.permute.xlu0 %54 }
  0xd5   :  { %v277_v17 = vpop.f32.mrf.mxu0  ;;  %v284_v18 = vpop.f32.mrf.mxu1 }
  0xd6   :  { %v136_v19 = vadd.f32 %v277_v17, %v55_v16  ;;  %v233_v20 = vadd.f32 %v284_v18, %v55_v16 }
  0xd7   :  { %v130_v21 = vpop.f32.mrf.mxu0  ;;  %v227_v22 = vpop.f32.mrf.mxu1 }
  0xd8   :  { %141 = vst.msk [vmem:[#allocation5 + $0x8] sm:$0xff] %vm139_vm1, %v136_v19  ;;  %238 = vst.msk [vmem:[#allocation5 + $0x18] sm:$0xff] %vm139_vm1, %v233_v20  ;;  %v131_v23 = vadd.f32 %v130_v21, %v50_v15  ;;  %v228_v24 = vadd.f32 %v227_v22, %v50_v15 }
  0xda   :  { %140 = vst.msk [vmem:[#allocation5] sm:$0xff] %vm139_vm1, %v131_v23  ;;  %237 = vst.msk [vmem:[#allocation5 + $0x10] sm:$0xff] %vm139_vm1, %v228_v24 }
  0xdb   :  { %322 = shalt.err (!%p319_p9)
}
  0xdc   :  { %250 = dma.vmem_to_hbm [thread:$0]  %s245_s6, 512, %s399_s4, [#allocation4], %s336_s18, %s336_s18, %s337_s19  }
  0xdd   :  { %333 = dma.done.wait [#allocation4], 512  }
  0xde   :  { %334 = vsyncadd [#allocation4], 4294966784 }
  0xdf   :  { %254 = vsyncpa [#allocation3], 1 }
  0xe0   :  { %255 = vsyncpa [#allocation4], 1 }

</bundles_post_ra>
